<compile_context>
chip_gen: v6e
topology: v6e:2x2x1
jax: 0.10.0
libtpu: 0.0.40
codegen_flags: <defaults>
</compile_context>

<pallas_src>
import functools

import jax
import jax.numpy as jnp
from jax.experimental import pallas as pl
from jax.experimental.pallas import tpu as pltpu

_MIB = 1024 * 1024


# ---------------------------------------------------------------------------
# Kernels
# ---------------------------------------------------------------------------
def _acc_bias_kernel(x_ref, w_ref, b_ref, o_ref, acc_ref):
    """Multi-K-step (tm, tn) tile; f32 VMEM accumulator; fused bias on last k."""
    k = pl.program_id(2)

    @pl.when(k == 0)
    def _():
        acc_ref[...] = jnp.zeros_like(acc_ref)

    acc_ref[...] += jnp.dot(
        x_ref[...].astype(w_ref.dtype), w_ref[...],
        preferred_element_type=jnp.float32,
    )

    @pl.when(k == pl.num_programs(2) - 1)
    def _():
        o_ref[...] = (
            acc_ref[...] + b_ref[...].astype(jnp.float32)
        ).astype(o_ref.dtype)


def _acc_nobias_kernel(x_ref, w_ref, o_ref, acc_ref):
    k = pl.program_id(2)

    @pl.when(k == 0)
    def _():
        acc_ref[...] = jnp.zeros_like(acc_ref)

    acc_ref[...] += jnp.dot(
        x_ref[...].astype(w_ref.dtype), w_ref[...],
        preferred_element_type=jnp.float32,
    )

    @pl.when(k == pl.num_programs(2) - 1)
    def _():
        o_ref[...] = acc_ref[...].astype(o_ref.dtype)


def _single_bias_kernel(x_ref, w_ref, b_ref, o_ref):
    """Single-K-step specialization: no scratch, no pl.when."""
    acc = jnp.dot(
        x_ref[...].astype(w_ref.dtype), w_ref[...],
        preferred_element_type=jnp.float32,
    )
    o_ref[...] = (acc + b_ref[...].astype(jnp.float32)).astype(o_ref.dtype)


def _single_nobias_kernel(x_ref, w_ref, o_ref):
    acc = jnp.dot(
        x_ref[...].astype(w_ref.dtype), w_ref[...],
        preferred_element_type=jnp.float32,
    )
    o_ref[...] = acc.astype(o_ref.dtype)


# ---------------------------------------------------------------------------
# VMEM budgeting / tile selection (generation aware, cached)
# ---------------------------------------------------------------------------
@functools.lru_cache(maxsize=None)
def _vmem_cap_bytes():
    """Physical VMEM per TensorCore; conservative fallback if query fails."""
    try:
        info = pltpu.get_tpu_info()
        cap = getattr(info, "vmem_capacity_bytes", None)
        if cap:
            return int(cap)
    except Exception:
        pass
    return 64 * _MIB  # v7x floor; v5e/v6e have 128 MiB


def _even_tile(dim, cap, align):
    """Largest tile <= cap (multiple of align, or == dim) with balanced blocks."""
    if dim <= cap:
        return dim
    nb = -(-dim // cap)
    while True:
        t = -(-dim // nb)                    # ceil(dim / nb): even split
        t = -(-t // align) * align           # round up to alignment
        if t <= cap:
            return t
        nb += 1


@functools.lru_cache(maxsize=None)
def _choose_tiles(M, K, N, xb, wb, ob, bb, with_bias, budget, sub_align):
    """Pick (tm, tn, tk) under a VMEM budget.

    Shrink order: tk first (doesn't change HBM traffic), then tn, then tm
    (tm/tn set the weight/activation reuse factors).  tk always either equals
    K, divides K exactly, or the caller zero-pads K to a tk multiple.
    """
    tm = _even_tile(M, 512, sub_align)
    tn = _even_tile(N, 1024, 128)

    def tk_cap(tm_, tn_):
        fixed = 2 * tm_ * tn_ * ob + tm_ * tn_ * 4
        if with_bias:
            fixed += 2 * tn_ * bb
        per_k = 2 * tm_ * xb + 2 * tn_ * wb
        return max((budget - fixed) // per_k, 0)

    # make sure at least a min(K, 128)-deep K tile fits: shrink tn, then tm
    while tk_cap(tm, tn) < min(K, 128):
        if tn > 128:
            tn = max(128, ((tn // 2) // 128) * 128)
        elif tm > sub_align:
            tm = max(sub_align, ((tm // 2) // sub_align) * sub_align)
        else:
            break

    cap = tk_cap(tm, tn)
    if K <= cap:
        tk = K                                    # single K step, no remainder
    else:
        tk = 0
        t = (cap // 128) * 128
        while t >= 512:                           # prefer an exact divisor of K
            if K % t == 0:
                tk = t
                break
            t -= 128
        if tk == 0:
            tk = max(128, (cap // 128) * 128)     # caller zero-pads K

    # guarantee >=2 parallel output tiles (keeps v7x's second TensorCore busy;
    # near-free on single-core chips: same work, one extra grid step)
    if (-(-M // tm)) * (-(-N // tn)) < 2:
        if N >= 256:
            tn = max(128, ((tn // 2) // 128) * 128)
        elif M >= 2 * sub_align:
            tm = max(sub_align, ((tm // 2) // sub_align) * sub_align)

    return tm, tn, tk


# ---------------------------------------------------------------------------
# pallas_call builder (cached per shape/dtype/tile configuration)
# ---------------------------------------------------------------------------
@functools.lru_cache(maxsize=None)
def _build_matmul(M, K, N, x_dtype, w_dtype, b_dtype, out_dtype, add_bias,
                  tm, tn, tk, vmem_limit):
    xb = jnp.dtype(x_dtype).itemsize
    wb = jnp.dtype(w_dtype).itemsize
    ob = jnp.dtype(out_dtype).itemsize
    bb = jnp.dtype(b_dtype).itemsize

    gm, gn, gk = pl.cdiv(M, tm), pl.cdiv(N, tn), pl.cdiv(K, tk)

    bytes_accessed = M * K * xb + K * N * wb + M * N * ob
    if add_bias:
        bytes_accessed += N * bb
    cost = pl.CostEstimate(flops=2 * M * N * K, transcendentals=0,
                           bytes_accessed=bytes_accessed)

    out_shape = jax.ShapeDtypeStruct((M, N), jnp.dtype(out_dtype))

    if gk == 1:
        # Single K step: no accumulator scratch, no pl.when.
        dims = ("parallel", "parallel")
        if add_bias:
            kernel = _single_bias_kernel
            in_specs = [
                pl.BlockSpec((tm, tk), lambda i, j: (i, 0)),
                pl.BlockSpec((tk, tn), lambda i, j: (0, j)),
                pl.BlockSpec((1, tn), lambda i, j: (0, j)),
            ]
        else:
            kernel = _single_nobias_kernel
            in_specs = [
                pl.BlockSpec((tm, tk), lambda i, j: (i, 0)),
                pl.BlockSpec((tk, tn), lambda i, j: (0, j)),
            ]
        grid_spec = pltpu.PrefetchScalarGridSpec(
            num_scalar_prefetch=0,
            grid=(gm, gn),
            in_specs=in_specs,
            out_specs=pl.BlockSpec((tm, tn), lambda i, j: (i, j)),
        )
    else:
        dims = ("parallel", "parallel", "arbitrary")
        if add_bias:
            kernel = _acc_bias_kernel
            in_specs = [
                pl.BlockSpec((tm, tk), lambda i, j, k: (i, k)),
                pl.BlockSpec((tk, tn), lambda i, j, k: (k, j)),
                pl.BlockSpec((1, tn), lambda i, j, k: (0, j)),
            ]
        else:
            kernel = _acc_nobias_kernel
            in_specs = [
                pl.BlockSpec((tm, tk), lambda i, j, k: (i, k)),
                pl.BlockSpec((tk, tn), lambda i, j, k: (k, j)),
            ]
        grid_spec = pltpu.PrefetchScalarGridSpec(
            num_scalar_prefetch=0,
            grid=(gm, gn, gk),
            in_specs=in_specs,
            out_specs=pl.BlockSpec((tm, tn), lambda i, j, k: (i, j)),
            scratch_shapes=[pltpu.VMEM((tm, tn), jnp.float32)],
        )

    fn = pl.pallas_call(
        kernel,
        out_shape=out_shape,
        grid_spec=grid_spec,
        compiler_params=pltpu.CompilerParams(
            dimension_semantics=dims,
            vmem_limit_bytes=int(vmem_limit),
        ),
        cost_estimate=cost,
    )
    return jax.jit(fn)


# ---------------------------------------------------------------------------
# Module
# ---------------------------------------------------------------------------
class PallasLinear:
    """JAX/Pallas equivalent of the PyTorch column-parallel Linear module."""

    def __init__(self, input_size, output_size, bias=True, skip_bias_add=False,
                 key=jax.random.PRNGKey(0), param_dtype=jnp.float32,
                 compute_dtype=None):
        self.input_size = input_size
        self.output_size = output_size
        self.skip_bias_add = skip_bias_add
        # PyTorch-layout weight (output_size, input_size), init.normal_.
        self.weight = jax.random.normal(
            key, (output_size, input_size), dtype=param_dtype)
        # (K, N) operand materialized ONCE, in the MXU-friendly compute dtype
        # (opt-in bf16 halves weight HBM traffic; f32 accumulation regardless).
        self.compute_dtype = jnp.dtype(
            compute_dtype if compute_dtype is not None else param_dtype)
        self.weight_t = jnp.asarray(self.weight.T, dtype=self.compute_dtype)
        # bias is always initialized to zero (matches the reference module)
        self.bias = jnp.zeros((output_size,), dtype=param_dtype) if bias else None

    def __call__(self, x):
        K, N = self.input_size, self.output_size
        orig_shape = x.shape
        x2d = x.reshape(-1, K)
        M = x2d.shape[0]

        add_bias = (self.bias is not None) and (not self.skip_bias_add)
        out_dtype = x2d.dtype

        xb = jnp.dtype(x2d.dtype).itemsize
        wb = self.compute_dtype.itemsize
        ob = jnp.dtype(out_dtype).itemsize
        bb = jnp.dtype(self.bias.dtype).itemsize if self.bias is not None else 4

        cap = _vmem_cap_bytes()
        # ~96 MiB scoped limit on 128-MiB chips (v5e/v6e), ~48 MiB on 64-MiB v7x.
        vmem_limit = max(min(3 * cap // 4, cap - 16 * _MIB), 32 * _MIB)
        budget = vmem_limit - 4 * _MIB
        sub_align = 16 if wb == 2 else 8

        tm, tn, tk = _choose_tiles(M, K, N, xb, wb, ob, bb, add_bias,
                                   budget, sub_align)

        w = self.weight_t
        Kp = K
        if K % tk != 0:
            # Zero-pad the reduction dim so no undefined K-tail is accumulated.
            # TODO(synk): pre-pad weight_t at init for such K to avoid the
            #             per-forward weight pad.
            Kp = (-(-K // tk)) * tk
            x2d = jnp.pad(x2d, ((0, 0), (0, Kp - K)))
            w = jnp.pad(w, ((0, Kp - K), (0, 0)))

        fn = _build_matmul(
            M, Kp, N,
            str(jnp.dtype(x2d.dtype)), str(self.compute_dtype),
            str(jnp.dtype(self.bias.dtype)) if self.bias is not None else "float32",
            str(jnp.dtype(out_dtype)),
            add_bias, tm, tn, tk, int(vmem_limit),
        )

        if add_bias:
            out2d = fn(x2d, w, self.bias.reshape(1, N))
        else:
            out2d = fn(x2d, w)

        out = out2d.reshape(*orig_shape[:-1], N)

        if self.skip_bias_add:
            return out, self.bias
        return out


if __name__ == "__main__":
    key = jax.random.PRNGKey(0)
    k_w, k_x = jax.random.split(key)

    batch, seq, input_size, output_size = 2, 8, 32, 64
    x = jax.random.normal(k_x, (batch, seq, input_size), dtype=jnp.float32)

    # standard path: Y = X W^T + b
    layer = PallasLinear(input_size, output_size, bias=True,
                         skip_bias_add=False, key=k_w)
    y = jax.block_until_ready(layer(x))
    y_ref = x @ layer.weight.T + layer.bias
    assert y.shape == (batch, seq, output_size)
    assert jnp.allclose(y, y_ref, atol=1e-4, rtol=1e-4)

    # skip_bias_add path: returns (X W^T, bias), no bias add inside the kernel
    layer2 = PallasLinear(input_size, output_size, bias=True,
                          skip_bias_add=True, key=k_w)
    y2, b2 = layer2(x)
    y2 = jax.block_until_ready(y2)
    assert jnp.allclose(y2, x @ layer2.weight.T, atol=1e-4, rtol=1e-4)
    assert jnp.allclose(b2, jnp.zeros((output_size,)))

    # no-bias path
    layer3 = PallasLinear(input_size, output_size, bias=False, key=k_w)
    y3 = jax.block_until_ready(layer3(x))
    assert jnp.allclose(y3, x @ layer3.weight.T, atol=1e-4, rtol=1e-4)

    # opt-in bf16 compute path (f32 accumulation); compare against a bf16-operand
    # reference so the tolerance only covers accumulation-order differences.
    layer4 = PallasLinear(input_size, output_size, bias=True,
                          skip_bias_add=False, key=k_w,
                          compute_dtype=jnp.bfloat16)
    y4 = jax.block_until_ready(layer4(x))
    ref4 = jnp.dot(
        x.reshape(-1, input_size).astype(jnp.bfloat16), layer4.weight_t,
        preferred_element_type=jnp.float32,
    ).reshape(batch, seq, output_size) + layer4.bias
    assert jnp.allclose(y4, ref4, atol=1e-2, rtol=1e-2)

    print("KERNEL_OK")
</pallas_src>

<mosaic_0001>
module attributes {stable_mosaic.version = 11 : i64} {
  func.func @_single_bias_kernel(%arg0: i32, %arg1: i32, %arg2: memref<8x32xf32, #tpu.memory_space<vmem>>, %arg3: memref<32x64xf32, #tpu.memory_space<vmem>>, %arg4: memref<1x64xf32, #tpu.memory_space<vmem>>, %arg5: memref<8x64xf32, #tpu.memory_space<vmem>>) attributes {dimension_semantics = [#tpu.dimension_semantics<parallel>, #tpu.dimension_semantics<parallel>], iteration_bounds = array<i64: 2, 1>, scalar_prefetch = 0 : i64, scratch_operands = 0 : i64, tpu.core_type = #tpu.core_type<tc>, window_params = [{transform_indices = @transform_0, window_bounds = array<i64: 8, 32>}, {transform_indices = @transform_1, window_bounds = array<i64: 32, 64>}, {transform_indices = @transform_2, window_bounds = array<i64: 1, 64>}, {transform_indices = @transform_3, window_bounds = array<i64: 8, 64>}]} {
    %c0 = arith.constant 0 : index
    %c0_0 = arith.constant 0 : index
    %0 = vector.load %arg2[%c0, %c0_0] : memref<8x32xf32, #tpu.memory_space<vmem>>, vector<8x32xf32>
    %c0_1 = arith.constant 0 : index
    %c0_2 = arith.constant 0 : index
    %1 = vector.load %arg3[%c0_1, %c0_2] : memref<32x64xf32, #tpu.memory_space<vmem>>, vector<32x64xf32>
    %cst = arith.constant dense<0.000000e+00> : vector<8x64xf32>
    %2 = tpu.matmul %0, %1, %cst {dimension_numbers = #tpu.dot_dimension_numbers<[1], [0], [0], [1], [0, 0, 1, 1], [], []>} : vector<8x32xf32>, vector<32x64xf32>, vector<8x64xf32> -> vector<8x64xf32>
    %c0_3 = arith.constant 0 : index
    %c0_4 = arith.constant 0 : index
    %3 = vector.load %arg4[%c0_3, %c0_4] : memref<1x64xf32, #tpu.memory_space<vmem>>, vector<1x64xf32>
    %4 = vector.broadcast %3 : vector<1x64xf32> to vector<8x64xf32>
    %5 = arith.addf %2, %4 : vector<8x64xf32>
    %c0_5 = arith.constant 0 : index
    %c0_6 = arith.constant 0 : index
    %6 = vector.load %arg5[%c0_5, %c0_6] : memref<8x64xf32, #tpu.memory_space<vmem>>, vector<8x64xf32>
    tpu.vector_store %arg5[%c0_5, %c0_6], %5 {strides = array<i32>} : memref<8x64xf32, #tpu.memory_space<vmem>>, vector<8x64xf32>,
    return
  }
  func.func @transform_0(%arg0: i32, %arg1: i32) -> (i32, i32) {
    %c0_i32 = arith.constant 0 : i32
    %c0_i32_0 = arith.constant 0 : i32
    return %arg0, %c0_i32 : i32, i32
  }
  func.func @transform_1(%arg0: i32, %arg1: i32) -> (i32, i32) {
    %c0_i32 = arith.constant 0 : i32
    %c0_i32_0 = arith.constant 0 : i32
    return %c0_i32, %arg1 : i32, i32
  }
  func.func @transform_2(%arg0: i32, %arg1: i32) -> (i32, i32) {
    %c0_i32 = arith.constant 0 : i32
    %c0_i32_0 = arith.constant 0 : i32
    return %c0_i32, %arg1 : i32, i32
  }
  func.func @transform_3(%arg0: i32, %arg1: i32) -> (i32, i32) {
    %c0_i32 = arith.constant 0 : i32
    return %arg0, %arg1 : i32, i32
  }
}

</mosaic_0001>

<bundles_post_ra>
// kernel: tpu_custom_call.1
= control target key start
LH: loop header
LB: loop body
LE: loop exit
PB: predicated region body
PF: predicated region fallthrough
CT: control target
= control target key end

     0   :  { %8 = vsyncpa [#allocation3], 0  ;;  %s896_s0 = inlined_call_operand.hbm [shape: f32[16,32], index: 0, kind: input, shape index: {}]   ;;  %s897_s1 = inlined_call_operand.hbm [shape: f32[32,64], index: 1, kind: input, shape index: {}]   ;;  %s898_s2 = inlined_call_operand.vmem [shape: f32[1,64], index: 2, kind: input, shape index: {}]   ;;  %s899_s3 = inlined_call_operand.hbm [shape: f32[16,64], index: 3, kind: output, shape index: {}]  }
   0x1   :  { %10 = vsyncpa [#allocation3 + $0x1], 0 }
   0x2   :  { %11 = vsyncpa [#allocation6], 0 }
   0x3   :  { %12 = vsyncpa [#allocation4], 0 }
   0x4   :  { %14 = vsyncpa [#allocation4 + $0x1], 0  ;;  %s720_s12 = smov 0   ;;  %s722_s13 = smov 0  }
   0x5   :  { %s724_s14 = smov 0   ;;  %s726_s15 = smov 0  }
   0x6   :  { %s728_s16 = smov 0   ;;  %s730_s17 = smov 0  }
   0x7 LB: > { %s442_s18 = sadd.s32 4294967295, %s691_s17   ;;  %s443_s19 = sadd.s32 4294967294, %s691_s17   ;;  %s691_s17 = sphi %s730_s17, %s20_s17   ;;  %s687_s16 = sphi %s728_s16, %s917_s16   ;;  %s683_s15 = sphi %s726_s15, %s916_s15   ;;  %s679_s14 = sphi %s724_s14, %s915_s14   ;;  %s675_s13 = sphi %s722_s13, %s914_s13   ;;  %s671_s12 = sphi %s720_s12, %s913_s12  }
   0x8   : > { %p52_p0 = scmp.ne.s32.totalorder %s675_s13, %s671_s12  ;;  %p754_p1 = scmp.eq.s32.totalorder %s442_s18, 0 }
   0x9   : > { %p758_p2 = scmp.eq.s32.totalorder %s442_s18, 1  ;;  %p136_p3 = scmp.eq.s32.totalorder %s443_s19, 1 }
   0xa   : > { %p764_p4 = por %p754_p1, %p52_p0  ;;  %p444_p5 = scmp.ge.s32.totalorder %s691_s17, 1 }
   0xb   : > { %p769_p6 = por %p136_p3, %p52_p0  ;;  %p143_p7 = scmp.lt.s32.totalorder %s691_s17, 3 }
   0xc   : > { %s903_s22 = scalar_select %p764_p4, 1, 0 }
   0xd   : > { %s904_s23 = scalar_select %p769_p6, 1, 0 }
   0xe   : > { %p774_p8 = pnand %p444_p5, %p143_p7  ;;  %s693_s25 = smov [#allocation5]  }
   0xf   : > { %s157_s26 = sshll.u32 %s693_s25, 4  ;;  %s32_s28 = sadd.s32 1, %s687_s16  ;;  %s158_s26 = int_to_ptr.vmem [resolvable:$true] %s157_s26 }
  0x10   : > { %p484_p9 = pneg %p774_p8  ;;  %s564_s29 = scalar_lea.vmem %s158_s26, 512 }
  0x11   : > { %p565_p13 = scmp.ne.s32.totalorder %s158_s26, %s564_s29  ;;  %p572_p5 = scmp.lt.s32.totalorder %s158_s26, %s158_s26 }
  0x12   : > { %p783_p11 = pnand %p484_p9, %p754_p1  ;;  %p573_p7 = scmp.lt.s32.totalorder %s564_s29, %s564_s29 }
  0x14   : > { %p555_p12 = pneg %p783_p11  ;;  %p574_p6 = por %p573_p7, %p572_p5 }
  0x16   : > { %p567_p0 = pnand %p565_p13, %p555_p12 }
  0x18   : > { %p568_p3 = pneg %p567_p0 }
  0x1a   : > { %p575_p4 = pnand %p574_p6, %p568_p3 }
  0x1c   : > { %578 = shalt.err (!%p575_p4)
}
  0x1d   : > { %s694_s30 = smov 128   ;;  %s695_s4 = smov 8  }
  0x1e   : > { %487 = dma.hbm_to_vmem [thread:$0]  (!%p783_p11), %s897_s1, 512, %s158_s26, [#allocation6], %s694_s30, %s694_s30, %s695_s4  }
  0x1f   : > { %p34_p6 = scmp.ge.s32.totalorder %s32_s28, 2  ;;  %s39_s7 = sadd.s32 1, %s679_s14 }
  0x20   : > { %p46_p4 = scmp.ne.s32.totalorder %s679_s14, %s675_s13  ;;  %p47_p9 = scmp.eq.s32.totalorder %s691_s17, 0 }
  0x21   : > { %s919_s28 = smov (%p34_p6, %s32_s28), 0  ;;  %p497_p0 = scmp.lt.s32.totalorder %s691_s17, 2 }
  0x22   : > { %p801_p12 = por %p47_p9, %p46_p4  ;;  %p807_p13 = por %p758_p2, %p46_p4 }
  0x23   : > { %s36_s10 = ssub.s32 %s687_s16, %s919_s28  ;;  %s177_s11 = sand.u32 1, %s679_s14  }
  0x24   : > { %p37_p11 = scmp.eq.s32.totalorder %s36_s10, 0  ;;  %s448_s18 = sshll.u32 %s177_s11, 3 }
  0x25   : > { %s449_s25 = sshll.u32 %s687_s16, 7  ;;  %s181_s30 = scalar_lea.vmem [#allocation2], %s448_s18 }
  0x26   : > { %s816_s19 = scalar_select %p37_p11, %s679_s14, %s39_s7  }
  0x27   : > { %s186_s29 = scalar_lea.hbm %s896_s0, %s449_s25  ;;  %s188_s4 = sshll.u32 %s181_s30, 4  ;;  %s189_s4 = int_to_ptr.vmem [resolvable:$true] %s188_s4 }
  0x28   : > { %p824_p2 = pnand %p497_p0, %p801_p12  ;;  %s178_s5 = scalar_lea.sflag [#allocation3], %s177_s11 }
  0x29   : > { %s592_s6 = scalar_lea.vmem %s189_s4, 128  ;;  %s696_s7 = smov [#allocation2]  }
  0x2a   : > { %p581_p3 = pneg %p824_p2  ;;  %p593_p5 = scmp.ne.s32.totalorder %s189_s4, %s592_s6 }
  0x2b   : > { %s597_s10 = sshll.u32 %s696_s7, 4  ;;  %s598_s10 = int_to_ptr.vmem [resolvable:$false] %s597_s10 }
  0x2c   : > { %p595_p7 = pnand %p593_p5, %p581_p3  ;;  %s599_s25 = scalar_lea.vmem %s598_s10, 256 }
  0x2d   : > { %p600_p4 = scmp.lt.s32.totalorder %s189_s4, %s598_s10  ;;  %p601_p9 = scmp.lt.s32.totalorder %s599_s25, %s592_s6 }
  0x2e   : > { %p596_p6 = pneg %p595_p7 }
  0x2f   : > { %p602_p11 = por %p601_p9, %p600_p4 }
  0x31   : > { %p603_p10 = pnand %p602_p11, %p596_p6 }
  0x33   : > { %606 = shalt.err (!%p603_p10)
}
  0x34   : > { %491 = dma.hbm_to_vmem [thread:$0]  (!%p824_p2), %s186_s29, 128, %s189_s4, %s178_s5  }
  0x35   : > { %197 = sbr.rel (%p774_p8) target bundleno = 278 (0x116), region = 32  ;;  %s835_s8 = sand.u32 (!%p774_p8), 1, %s675_s13  }
  0x36   : > { %s451_s11 = sshll.u32 (!%p774_p8), %s835_s8, 3  ;;  %s200_s18 = scalar_lea.sflag (!%p774_p8), [#allocation3], %s835_s8 }
  0x37   : > { %s203_s26 = scalar_lea.vmem (!%p774_p8), [#allocation2], %s451_s11  ;;  %p910_p12 = scmp.ne.s32.totalorder (!%p774_p8), %s903_s22, 0 }
  0x3a   : > { %658 = dma.done.wait (%p910_p12), %s200_s18, 128  }
  0x3b   : > { %660 = vsyncadd (%p910_p12), %s200_s18, 4294967168 }
  0x3c   : > { %662 = dma.done.wait (%p754_p1), [#allocation6], 512  }
  0x3d   : > { %664 = vsyncadd (%p754_p1), [#allocation6], 4294966784  ;;  %v697_v0 = vmov 0.0   ;;  %vm698_vm0 = vmmov 0   ;;  %v240_v1 = vld [vmem:[#allocation5 + $0x18] sm:$0xff]  ;;  %v239_v2 = vld [vmem:[#allocation5 + $0x10] sm:$0xff] }
  0x3e   : > { %465 = vmatprep.subr.mxu0 %v697_v0  ;;  %473 = vmatprep.mubr.msk.f32.mxu0 %vm698_vm0, %v697_v0  ;;  %v238_v3 = vld [vmem:[#allocation5 + $0x8] sm:$0xff]  ;;  %v237_v4 = vld [vmem:[#allocation5] sm:$0xff]  ;;  %v236_v5 = vld [vmem:[%s203_s26] sm:$0xff]  ;;  %vm248_vm1 = vcmask 261120   ;;  %s457_s24 = sshll.u32 %s683_s15, 7  ;;  %s232_s27 = scalar_lea.vmem [#allocation7], %s451_s11 }
  0x3f   : > { %466 = vmatpush3.msra.mxu0 %v240_v1  ;;  %v454_v6 = vld [vmem:[%s898_s2] ss:$0 sm:$0xff]  ;;  %s339_s29 = sshll.u32 %s232_s27, 4  ;;  %vm322_vm2 = vcmask 523264   ;;  %s854_s21 = scalar_lea.hbm %s899_s3, %s457_s24  ;;  %s340_s29 = int_to_ptr.vmem [resolvable:$true] %s339_s29 }
  0x40   : > { %467 = vmatprep.subr.mxu0 %v697_v0  ;;  %s325_s5 = scalar_lea.sflag [#allocation4], %s835_s8  ;;  %s607_s6 = scalar_lea.vmem %s340_s29, 128 }
  0x41   : > { %468 = vmatpush3.msra.mxu0 %v239_v2  ;;  %p608_p1 = scmp.ne.s32.totalorder %s340_s29, %s607_s6  ;;  %s699_s15 = smov [#allocation7]  }
  0x42   : > { %469 = vmatprep.subr.mxu0 %v697_v0  ;;  %s611_s7 = sshll.u32 %s699_s15, 4  ;;  %s612_s7 = int_to_ptr.vmem [resolvable:$false] %s611_s7 }
  0x43   : > { %470 = vmatpush3.msra.mxu0 %v238_v3  ;;  %p609_p8 = pnand %p608_p1, %p807_p13  ;;  %s613_s10 = scalar_lea.vmem %s612_s7, 256 }
  0x44   : > { %471 = vmatprep.subr.mxu0 %v697_v0  ;;  %p614_p0 = scmp.lt.s32.totalorder %s340_s29, %s612_s7  ;;  %p615_p2 = scmp.lt.s32.totalorder %s613_s10, %s607_s6 }
  0x45   : > { %472 = vmatpush3.msra.mxu0 %v237_v4  ;;  %p610_p10 = pneg %p609_p8 }
  0x46   : > { %474 = vmatmul.mubr.msk.f32.vlgmr.msra.gmra.mxu0 %vm248_vm1, %v236_v5  ;;  %p616_p3 = por %p615_p2, %p614_p0 }
  0x48   : > { %p617_p5 = pnand %p616_p3, %p610_p10 }
 0x106   : > { %v318_v7 = vpop.f32.mrf.mxu0 }
 0x107   : > { %v319_v8 = vadd.f32 %v454_v6, %v318_v7 }
 0x108   : > { %v475_v9 = vpop.f32.mrf.mxu0 }
 0x109   : > { %323 = vst.msk [vmem:[%s232_s27] sm:$0xff] %vm322_vm2, %v319_v8 }
 0x10a   : > { %620 = shalt.err (!%p617_p5)
}
 0x10b   : > { %s621_s25 = scalar_lea.hbm %s854_s21, 128  ;;  %s625_s18 = scalar_lea.hbm %s899_s3, 256 }
 0x10c   : > { %p622_p7 = scmp.ne.s32.totalorder %s854_s21, %s621_s25  ;;  %p626_p9 = scmp.lt.s32.totalorder %s854_s21, %s899_s3 }
 0x10d   : > { %p627_p11 = scmp.lt.s32.totalorder %s625_s18, %s621_s25 }
 0x10e   : > { %p623_p6 = pnand %p622_p7, %p807_p13 }
 0x10f   : > { %p628_p12 = por %p627_p11, %p626_p9 }
 0x110   : > { %p624_p4 = pneg %p623_p6 }
 0x112   : > { %p629_p1 = pnand %p628_p12, %p624_p4 }
 0x114   : > { %632 = shalt.err (!%p629_p1)
}
 0x115   : > { %482 = dma.vmem_to_hbm [thread:$0]  (%p807_p13), %s340_s29, 128, %s854_s21, %s325_s5  }
 0x116 PF: > { %s351_s22 = sand.u32 1, %s671_s12   ;;  %p911_p8 = scmp.ne.s32.totalorder %s904_s23, 0 }
 0x117   : > { %p912_p10 = scmp.ge.s32.totalorder %s691_s17, 2  ;;  %s352_s24 = scalar_lea.sflag [#allocation4], %s351_s22 }
 0x119   : > { %p493_p0 = pnand %p912_p10, %p911_p8 }
 0x11b   : > { %p494_p2 = pneg %p493_p0 }
 0x11d   : > { %666 = dma.done.wait (%p494_p2), %s352_s24, 128  }
 0x11e   : > { %668 = vsyncadd (%p494_p2), %s352_s24, 4294967168  ;;  %s20_s17 = sadd.s32 1, %s691_s17   ;;  %s913_s12 = smov %s675_s13 }
 0x11f   : > { %p17_p3 = scmp.ge.s32.totalorder %s20_s17, 4   ;;  %s914_s13 = smov %s679_s14 }
 0x120   : > { %s915_s14 = smov %s816_s19  ;;  %s916_s15 = smov %s687_s16 }
 0x121   : > { %s917_s16 = smov %s919_s28  ;;  %19 = sbr.rel (!%p17_p3) target bundleno = 7 (0x7), region = 85 }
 0x126   :  { %357 = vsyncpa [#allocation3], 1 }
 0x127   :  { %359 = vsyncpa [#allocation3 + $0x1], 1 }
 0x128   :  { %360 = vsyncpa [#allocation6], 1 }
 0x129   :  { %361 = vsyncpa [#allocation4], 1 }
 0x12a   :  { %363 = vsyncpa [#allocation4 + $0x1], 1 }

</bundles_post_ra>
